<compile_context>
chip_gen: v7x
topology: tpu7x:2x2x1
jax: 0.10.0
libtpu: 0.0.40
codegen_flags: <defaults>
</compile_context>

<pallas_src>
import numpy as np
import jax
import jax.numpy as jnp
from jax import lax
from jax.experimental import pallas as pl
from jax.experimental.pallas import tpu as pltpu

USE_HARD = False  # matches `use_hard = False` in the reference module

_LANE_CHOICES = (4096, 2048, 1024, 512, 256, 128)


def _pick_block_bytes():
    """Per-generation target block size and (optional) scoped-VMEM raise."""
    kind = ""
    try:
        kind = jax.devices()[0].device_kind.lower()
    except Exception:
        pass
    if "v7" in kind:                                   # v7x: 3.2 TB/s -> big blocks
        return 6 << 20, 48 << 20
    if "v6" in kind:                                   # v6e (Trillium)
        return 4 << 20, 48 << 20
    if "v5 lite" in kind or "v5e" in kind or "v5lite" in kind:   # v5e
        return 2 << 20, None                           # fits 16 MiB default scope
    return 3 << 20, None                               # unknown: stay in default scope


def _make_kernel(use_hard: bool, block_rows: int, lanes: int,
                 rows_total: int, mask_tail: bool):
    def kernel(x_ref, o_ref, flag_ref):
        x = x_ref[...]
        if use_hard:
            # relu6(x + 3) / 6 — pure VPU ops
            y = jnp.clip(x + 3.0, 0.0, 6.0) * (1.0 / 6.0)
        else:
            # sigmoid(x): exp goes to the EUP slot, rest is VPU; fused into the
            # HBM->VMEM->HBM stream so bytes moved == 2 * tensor bytes.
            y = jax.nn.sigmoid(x)
        o_ref[...] = y.astype(o_ref.dtype)

        # Fused NaN detection on the result block (mirrors torch.isnan(res)).
        nan_f = jnp.isnan(y).astype(jnp.float32)
        if mask_tail:
            # Last grid step may be a partial block; ignore out-of-bounds rows
            # (their VMEM contents are undefined and must not poison the flag).
            row = lax.broadcasted_iota(jnp.int32, (block_rows, lanes), 0)
            valid = (pl.program_id(0) * block_rows + row) < rows_total
            nan_f = jnp.where(valid, nan_f, 0.0)
        lane_max = jnp.max(nan_f, axis=1, keepdims=True)    # (block_rows, 1) XLU
        blk_max = jnp.max(lane_max, axis=0, keepdims=True)  # (1, 1)
        flag_ref[0] = jnp.broadcast_to(blk_max, (8, 128))   # one tiny tile / step

    return kernel


def hsigmoid_pallas(x: jax.Array, use_hard: bool = USE_HARD,
                    check_nan: bool = True) -> jax.Array:
    """Equivalent of the PyTorch Hsigmoid.forward (sigmoid path, use_hard=False)."""
    orig_shape = x.shape
    total = int(np.prod(orig_shape))
    if total == 0:
        return x  # empty tensor: nothing to do, NaN check trivially passes
    itemsize = jnp.dtype(x.dtype).itemsize

    # Lane-dense relayout: (rows, lanes) with lanes a multiple of 128 chosen so
    # it divides `total` -> metadata-only reshape, no pad, unmasked lane tiles.
    lanes = next((l for l in _LANE_CHOICES if total % l == 0), None)
    xf = jnp.reshape(x, (-1,))
    if lanes is None:
        # Rare fallback: element count not a multiple of 128 -> pad up to 128.
        lanes = 128
        padded_total = -(-total // lanes) * lanes
        xf = jnp.pad(xf, (0, padded_total - total))
    else:
        padded_total = total
    rows = padded_total // lanes
    x2 = jnp.reshape(xf, (rows, lanes))

    block_bytes, vmem_limit = _pick_block_bytes()
    target_rows = max(8, (block_bytes // (lanes * itemsize)) // 8 * 8)
    # block_rows is either a multiple of 8 or the full row extent -> always a
    # legal (8,128)-aligned BlockSpec; a ragged tail becomes a partial block.
    block_rows = rows if rows <= target_rows else target_rows
    num_blocks = pl.cdiv(rows, block_rows)
    mask_tail = (rows % block_rows) != 0

    kernel = _make_kernel(use_hard, block_rows, lanes, rows, mask_tail)

    cp_kwargs = dict(dimension_semantics=("parallel",))
    if vmem_limit is not None:
        cp_kwargs["vmem_limit_bytes"] = vmem_limit
    # TODO(synk): profile on v7x and switch to pltpu.CORE_PARALLEL (or an
    # explicit core_map split) if the "parallel" axis is not sharded across
    # both TensorCores.

    y2, flags = pl.pallas_call(
        kernel,
        out_shape=(
            jax.ShapeDtypeStruct((rows, lanes), x.dtype),
            jax.ShapeDtypeStruct((num_blocks, 8, 128), jnp.float32),
        ),
        grid_spec=pltpu.PrefetchScalarGridSpec(
            num_scalar_prefetch=0,
            grid=(num_blocks,),
            in_specs=[pl.BlockSpec((block_rows, lanes), lambda i: (i, 0))],
            out_specs=(
                pl.BlockSpec((block_rows, lanes), lambda i: (i, 0)),
                pl.BlockSpec((1, 8, 128), lambda i: (i, 0, 0)),
            ),
        ),
        compiler_params=pltpu.CompilerParams(**cp_kwargs),
    )(x2)

    if padded_total != total:
        res = jnp.reshape(jnp.reshape(y2, (-1,))[:total], orig_shape)
    else:
        res = jnp.reshape(y2, orig_shape)

    if check_nan:
        # Mirrors `if torch.isnan(res).any().item(): raise ValueError()`.
        # Only the few-KB flag array is reduced / synced, not the full result.
        if bool(jax.device_get(jnp.any(flags > 0.0))):
            raise ValueError()
    return res


if __name__ == "__main__":
    key = jax.random.PRNGKey(0)
    # Small NCHW-style input consistent with the module's use inside mbfc.
    x = jax.random.normal(key, (2, 4, 16, 16), dtype=jnp.float32)

    y = jax.block_until_ready(hsigmoid_pallas(x))
    ref = jax.nn.sigmoid(x)
    assert y.shape == x.shape, y.shape
    assert y.dtype == x.dtype, y.dtype
    np.testing.assert_allclose(np.asarray(y), np.asarray(ref), rtol=1e-6, atol=1e-6)

    # Non-128-aligned element count exercises the rare padded fallback path.
    x_odd = jax.random.normal(jax.random.PRNGKey(0), (3, 5, 7), dtype=jnp.float32)
    y_odd = jax.block_until_ready(hsigmoid_pallas(x_odd))
    np.testing.assert_allclose(np.asarray(y_odd), np.asarray(jax.nn.sigmoid(x_odd)),
                               rtol=1e-6, atol=1e-6)

    # NaN input must raise ValueError (fused in-kernel flag path).
    x_nan = x.at[0, 0, 0, 0].set(jnp.nan)
    raised = False
    try:
        hsigmoid_pallas(x_nan)
    except ValueError:
        raised = True
    assert raised, "NaN input did not raise ValueError"

    print("KERNEL_OK")
</pallas_src>

<mosaic_0001>
module attributes {stable_mosaic.version = 11 : i64} {
  func.func @kernel(%arg0: i32, %arg1: memref<1x2048xf32, #tpu.memory_space<vmem>>, %arg2: memref<1x2048xf32, #tpu.memory_space<vmem>>, %arg3: memref<1x8x128xf32, #tpu.memory_space<vmem>>) attributes {dimension_semantics = [#tpu.dimension_semantics<parallel>], iteration_bounds = array<i64: 1>, scalar_prefetch = 0 : i64, scratch_operands = 0 : i64, tpu.core_type = #tpu.core_type<tc>, window_params = [{transform_indices = @transform_0, window_bounds = array<i64: 1, 2048>}, {transform_indices = @transform_1, window_bounds = array<i64: 1, 2048>}, {transform_indices = @transform_2, window_bounds = array<i64: 1, 8, 128>}]} {
    %c0 = arith.constant 0 : index
    %c0_0 = arith.constant 0 : index
    %0 = vector.load %arg1[%c0, %c0_0] : memref<1x2048xf32, #tpu.memory_space<vmem>>, vector<1x2048xf32>
    %1 = arith.negf %0 : vector<1x2048xf32>
    %2 = math.exp %1 : vector<1x2048xf32>
    %cst = arith.constant 1.000000e+00 : f32
    %3 = vector.broadcast %cst : f32 to vector<1x2048xf32>
    %4 = arith.addf %3, %2 : vector<1x2048xf32>
    %5 = arith.divf %3, %4 : vector<1x2048xf32>
    %c0_1 = arith.constant 0 : index
    %c0_2 = arith.constant 0 : index
    %6 = vector.load %arg2[%c0_1, %c0_2] : memref<1x2048xf32, #tpu.memory_space<vmem>>, vector<1x2048xf32>
    tpu.vector_store %arg2[%c0_1, %c0_2], %5 {strides = array<i32>} : memref<1x2048xf32, #tpu.memory_space<vmem>>, vector<1x2048xf32>,
    %7 = arith.cmpf one, %5, %5 : vector<1x2048xf32>
    %8 = arith.extui %7 : vector<1x2048xi1> to vector<1x2048xi32>
    %9 = arith.sitofp %8 : vector<1x2048xi32> to vector<1x2048xf32>
    %cst_3 = arith.constant dense<0xFF800000> : vector<1xf32>
    %10 = vector.multi_reduction <maximumf>, %9, %cst_3 [1] : vector<1x2048xf32> to vector<1xf32>
    %11 = vector.shape_cast %10 : vector<1xf32> to vector<1x1xf32>
    %cst_4 = arith.constant dense<0xFF800000> : vector<1xf32>
    %12 = vector.multi_reduction <maximumf>, %11, %cst_4 [0] : vector<1x1xf32> to vector<1xf32>
    %13 = vector.shape_cast %12 : vector<1xf32> to vector<1x1xf32>
    %14 = vector.shape_cast %13 : vector<1x1xf32> to vector<1x1xf32>
    %15 = vector.broadcast %14 : vector<1x1xf32> to vector<8x128xf32>
    %c0_5 = arith.constant 0 : index
    %c0_6 = arith.constant 0 : index
    %c0_7 = arith.constant 0 : index
    %16 = vector.load %arg3[%c0_5, %c0_6, %c0_7] : memref<1x8x128xf32, #tpu.memory_space<vmem>>, vector<1x8x128xf32>
    %17 = vector.shape_cast %16 : vector<1x8x128xf32> to vector<8x128xf32>
    %18 = vector.shape_cast %15 : vector<8x128xf32> to vector<1x8x128xf32>
    tpu.vector_store %arg3[%c0_5, %c0_6, %c0_7], %18 {strides = array<i32>} : memref<1x8x128xf32, #tpu.memory_space<vmem>>, vector<1x8x128xf32>,
    return
  }
  func.func @transform_0(%arg0: i32) -> (i32, i32) {
    %c0_i32 = arith.constant 0 : i32
    %c0_i32_0 = arith.constant 0 : i32
    return %arg0, %c0_i32 : i32, i32
  }
  func.func @transform_1(%arg0: i32) -> (i32, i32) {
    %c0_i32 = arith.constant 0 : i32
    %c0_i32_0 = arith.constant 0 : i32
    return %arg0, %c0_i32 : i32, i32
  }
  func.func @transform_2(%arg0: i32) -> (i32, i32, i32) {
    %c0_i32 = arith.constant 0 : i32
    %c0_i32_0 = arith.constant 0 : i32
    %c0_i32_1 = arith.constant 0 : i32
    return %arg0, %c0_i32, %c0_i32_0 : i32, i32, i32
  }
}

</mosaic_0001>

<bundles_post_ra>
// kernel: tpu_custom_call.1
= control target key start
LH: loop header
LB: loop body
LE: loop exit
PB: predicated region body
PF: predicated region fallthrough
CT: control target
= control target key end

     0   :  { %8 = vsyncpa [#allocation3], 0  ;;  %s360_s0 = inlined_call_operand.hbm [shape: f32[1,2048], index: 0, kind: input, shape index: {}]   ;;  %s361_s1 = inlined_call_operand.hbm [shape: f32[1,2048], index: 1, kind: output, shape index: {0}]   ;;  %s362_s2 = inlined_call_operand.hbm [shape: f32[1,8,128], index: 2, kind: output, shape index: {1}]  }
   0x1   :  { %9 = vsyncpa [#allocation4], 0 }
   0x2   :  { %10 = vsyncpa [#allocation7], 0  ;;  %s284_s9 = smov [#allocation2]   ;;  %s212_s13 = scalar_lea.hbm %s360_s0, 256 }
   0x3   :  { %s17_s10 = sshll.u32 %s284_s9, 4  ;;  %p213_p0 = scmp.ne.s32.totalorder %s360_s0, %s212_s13  ;;  %s18_s10 = int_to_ptr.vmem [resolvable:$true] %s17_s10 }
   0x4   :  { %p216_p1 = scmp.lt.u32.totalorder %s212_s13, %s360_s0 }
   0x6   :  { %p218_p2 = pnand %p216_p1, %p213_p0 }
   0x8   :  { %221 = shalt.err (!%p218_p2)
}
   0x9   :  { %s222_s18 = scalar_lea.vmem %s18_s10, 256  ;;  %p227_p4 = scmp.lt.s32.totalorder %s18_s10, %s18_s10 }
   0xa   :  { %p223_p3 = scmp.ne.s32.totalorder %s18_s10, %s222_s18  ;;  %p228_p5 = scmp.lt.s32.totalorder %s222_s18, %s222_s18 }
   0xc   :  { %p229_p6 = por %p228_p5, %p227_p4 }
   0xe   :  { %p230_p7 = pnand %p229_p6, %p223_p3 }
  0x10   :  { %233 = shalt.err (!%p230_p7)
}
  0x11   :  { %20 = dma.hbm_to_vmem [thread:$0]  %s360_s0, 256, %s18_s10, [#allocation3]  }
  0x12   :  { %278 = dma.done.wait [#allocation3], 256  }
  0x13   :  { %279 = vsyncadd [#allocation3], 4294967040  ;;  %v24_v0 = vld [vmem:[#allocation2] sm:$0xff]  ;;  %v25_v1 = vld [vmem:[#allocation2 + $0x8] sm:$0xff]  ;;  %v48_v8 = vlaneseq  ;;  %v285_v20 = vmov 0.0   ;;  %vm128_vm2 = vcmask 1040384  }
  0x14   :  { %v196_v2 = vmul.f32 -1.442695, %v24_v0  ;;  %v197_v3 = vmul.f32 -1.442695, %v25_v1  ;;  %s286_s0 = smov [#allocation5]  }
  0x15   :  { %v49_v9 = vshrl.u32 %v48_v8, 7  ;;  %s173_s21 = sshll.u32 %s286_s0, 4  ;;  %s174_s21 = int_to_ptr.vmem [resolvable:$true] %s173_s21 }
  0x16   :  { %204 = vpow2.f32 %v196_v2  ;;  %s234_s22 = scalar_lea.vmem %s174_s21, 256  ;;  %p239_p9 = scmp.lt.s32.totalorder %s174_s21, %s174_s21 }
  0x17   :  { %206 = vpow2.f32 %v197_v3  ;;  %v315_v10 = vsub.s32 0, %v49_v9  ;;  %v54_v11 = vsub.s32 1, %v49_v9  ;;  %v58_v12 = vsub.s32 2, %v49_v9  ;;  %p235_p8 = scmp.ne.s32.totalorder %s174_s21, %s234_s22  ;;  %p240_p10 = scmp.lt.s32.totalorder %s234_s22, %s234_s22 }
  0x18   :  { %v62_v14 = vsub.s32 3, %v49_v9  ;;  %v66_v15 = vsub.s32 4, %v49_v9  ;;  %v70_v16 = vsub.s32 5, %v49_v9  ;;  %v74_v17 = vsub.s32 6, %v49_v9 }
  0x19   :  { %v78_v19 = vsub.s32 7, %v49_v9  ;;  %p241_p11 = por %p240_p10, %p239_p9 }
  0x1b   :  { %p242_p12 = pnand %p241_p11, %p235_p8 }
  0x20   :  { %v205_v4 = vpop.eup %204 }
  0x21   :  { %v207_v5 = vpop.eup %206  ;;  %v32_v6 = vadd.f32 1.0, %v205_v4 }
  0x22   :  { %v33_v7 = vadd.f32 1.0, %v207_v5 }
  0x23   :  { %208 = vrcp.f32 %v32_v6 }
  0x24   :  { %210 = vrcp.f32 %v33_v7 }
  0x2d   :  { %v209_v13 = vpop.eup %208 }
  0x2e   :  { %v211_v18 = vpop.eup %210  ;;  %vm40_vm0 = vcmp.ne.f32.partialorder %v209_v13, %v209_v13  ;;  %38 = vst [vmem:[#allocation5] sm:$0xff] %v209_v13 }
  0x2f   :  { %vm41_vm1 = vcmp.ne.f32.partialorder %v211_v18, %v211_v18  ;;  %v198_v21 = vsel %vm40_vm0, 1.0, %v285_v20  ;;  %39 = vst [vmem:[#allocation5 + $0x8] sm:$0xff] %v211_v18 }
  0x30   :  { %v199_v22 = vsel %vm41_vm1, 1.0, %v285_v20  ;;  %v51_v23 = vrot.slane %v198_v21, %v315_v10  ;;  %v55_v24 = vrot.slane %v198_v21, %v54_v11  ;;  %v59_v25 = vrot.slane %v198_v21, %v58_v12 }
  0x31   :  { %v63_v26 = vrot.slane %v198_v21, %v62_v14  ;;  %v67_v27 = vrot.slane %v198_v21, %v66_v15  ;;  %v71_v28 = vrot.slane %v198_v21, %v70_v16  ;;  %v75_v29 = vrot.slane %v198_v21, %v74_v17 }
  0x32   :  { %v79_v30 = vrot.slane %v198_v21, %v78_v19  ;;  %v83_v31 = vrot.slane %v199_v22, %v315_v10  ;;  %v87_v32 = vrot.slane %v199_v22, %v54_v11  ;;  %v91_v33 = vrot.slane %v199_v22, %v58_v12 }
  0x33   :  { %v95_v34 = vrot.slane %v199_v22, %v62_v14  ;;  %v99_v35 = vrot.slane %v199_v22, %v66_v15  ;;  %v103_v36 = vrot.slane %v199_v22, %v70_v16  ;;  %v107_v37 = vrot.slane %v199_v22, %v74_v17 }
  0x34   :  { %v111_v38 = vrot.slane %v199_v22, %v78_v19  ;;  %v129_v39 = vsel %vm128_vm2, %v51_v23, -inf  ;;  %v130_v40 = vsel %vm128_vm2, %v55_v24, -inf  ;;  %v131_v41 = vsel %vm128_vm2, %v59_v25, -inf }
  0x35   :  { %v132_v42 = vsel %vm128_vm2, %v63_v26, -inf  ;;  %v133_v43 = vsel %vm128_vm2, %v67_v27, -inf  ;;  %v135_v44 = vsel %vm128_vm2, %v71_v28, -inf  ;;  %v137_v45 = vsel %vm128_vm2, %v75_v29, -inf }
  0x36   :  { %v134_v46 = vmax.f32 %v129_v39, %v133_v43  ;;  %v136_v47 = vmax.f32 %v130_v40, %v135_v44  ;;  %v138_v48 = vmax.f32 %v131_v41, %v137_v45  ;;  %v139_v49 = vsel %vm128_vm2, %v79_v30, -inf }
  0x37   :  { %v140_v50 = vmax.f32 %v132_v42, %v139_v49  ;;  %v141_v51 = vsel %vm128_vm2, %v83_v31, -inf  ;;  %v143_v52 = vsel %vm128_vm2, %v87_v32, -inf  ;;  %v145_v53 = vsel %vm128_vm2, %v91_v33, -inf }
  0x38   :  { %v142_v54 = vmax.f32 %v134_v46, %v141_v51  ;;  %v144_v55 = vmax.f32 %v136_v47, %v143_v52  ;;  %v146_v56 = vmax.f32 %v138_v48, %v145_v53  ;;  %v147_v57 = vsel %vm128_vm2, %v95_v34, -inf }
  0x39   :  { %v148_v58 = vmax.f32 %v140_v50, %v147_v57  ;;  %v149_v59 = vsel %vm128_vm2, %v99_v35, -inf  ;;  %v151_v60 = vsel %vm128_vm2, %v103_v36, -inf  ;;  %v153_v61 = vsel %vm128_vm2, %v107_v37, -inf }
  0x3a   :  { %v150_v62 = vmax.f32 %v142_v54, %v149_v59  ;;  %v152_v63 = vmax.f32 %v144_v55, %v151_v60  ;;  %v154_v0 = vmax.f32 %v146_v56, %v153_v61  ;;  %v155_v1 = vsel %vm128_vm2, %v111_v38, -inf }
  0x3b   :  { %v156_v2 = vmax.f32 %v148_v58, %v155_v1 }
  0x3c   :  { %v157_v3 = vmax.f32 %v150_v62, %v152_v63 }
  0x3d   :  { %v158_v4 = vmax.f32 %v154_v0, %v156_v2 }
  0x3f   :  { %v159_v5 = vmax.f32 %v157_v3, %v158_v4 }
  0x41   :  { %160 = vmax.xlane.f32.xlu0 %v159_v5 }
  0x42   :  { %245 = shalt.err (!%p242_p12)
}
  0x43   :  { %s246_s25 = scalar_lea.hbm %s361_s1, 256 }
  0x44   :  { %p247_p13 = scmp.ne.s32.totalorder %s361_s1, %s246_s25  ;;  %p250_p0 = scmp.lt.u32.totalorder %s246_s25, %s361_s1 }
  0x46   :  { %p252_p1 = pnand %p250_p0, %p247_p13 }
  0x48   :  { %255 = shalt.err (!%p252_p1)
}
  0x49   :  { %176 = dma.vmem_to_hbm [thread:$0]  %s174_s21, 256, %s361_s1, [#allocation4]  }
  0x4a   :  { %s287_s4 = smov [#allocation6]  }
  0x4b   :  { %s183_s5 = sshll.u32 %s287_s4, 4  ;;  %s184_s5 = int_to_ptr.vmem [resolvable:$true] %s183_s5 }
  0x4c   :  { %s256_s6 = scalar_lea.vmem %s184_s5, 128  ;;  %p261_p3 = scmp.lt.s32.totalorder %s184_s5, %s184_s5 }
  0x4d   :  { %p257_p2 = scmp.ne.s32.totalorder %s184_s5, %s256_s6  ;;  %p262_p4 = scmp.lt.s32.totalorder %s256_s6, %s256_s6 }
  0x4f   :  { %p263_p5 = por %p262_p4, %p261_p3 }
  0x51   :  { %p264_p6 = pnand %p263_p5, %p257_p2 }
  0xce   :  { %v161_v6 = vpop.xlane.xlu0 %160 }
  0xcf   :  { %v165_v7 = vrot.slane %v161_v6, %v315_v10 }
  0xd1   :  { %166 = vst [vmem:[#allocation6] sm:$0xff] %v165_v7 }
  0xd2   :  { %267 = shalt.err (!%p264_p6)
}
  0xd3   :  { %s268_s9 = scalar_lea.hbm %s362_s2, 128 }
  0xd4   :  { %p269_p7 = scmp.ne.s32.totalorder %s362_s2, %s268_s9  ;;  %p272_p8 = scmp.lt.u32.totalorder %s268_s9, %s362_s2 }
  0xd6   :  { %p274_p9 = pnand %p272_p8, %p269_p7 }
  0xd8   :  { %277 = shalt.err (!%p274_p9)
}
  0xd9   :  { %186 = dma.vmem_to_hbm [thread:$0]  %s184_s5, 128, %s362_s2, [#allocation7]  }
  0xda   :  { %280 = dma.done.wait [#allocation4], 256  }
  0xdb   :  { %281 = vsyncadd [#allocation4], 4294967040 }
  0xdc   :  { %282 = dma.done.wait [#allocation7], 128  }
  0xdd   :  { %283 = vsyncadd [#allocation7], 4294967168 }
  0xde   :  { %193 = vsyncpa [#allocation3], 1 }
  0xdf   :  { %194 = vsyncpa [#allocation4], 1 }
  0xe0   :  { %195 = vsyncpa [#allocation7], 1 }

</bundles_post_ra>
